<compile_context>
chip_gen: v7x
topology: tpu7x:2x2x1
jax: 0.10.0
libtpu: 0.0.40
codegen_flags: <defaults>
</compile_context>

<pallas_src>
import functools

import jax
import jax.numpy as jnp
from jax.experimental import pallas as pl
from jax.experimental.pallas import tpu as pltpu


def _head_kernel(x_ref, w1_ref, b1_ref, w2_ref, b2_ref, o_ref, *, num_classes):
    """Fused head on one (block_b, F) batch tile:
    x @ W1 + b1 -> ReLU -> (Dropout=identity, eval) -> @ W2 + b2
    -> masked LogSoftmax over the (padded) class axis."""
    x = x_ref[...]                                              # (Bm, F) bf16

    # Linear(F, 128) + ReLU  (bf16 x bf16 -> f32 accumulation on the MXU)
    h = jnp.dot(x, w1_ref[...], preferred_element_type=jnp.float32)
    h = h + b1_ref[...]                                         # (Bm, H) f32
    h = jnp.maximum(h, 0.0)

    # Dropout: eval-mode (inference) => identity. Matches nn.Dropout in eval().
    # TODO(synk): training-mode dropout (pltpu.prng_seed / prng_random_bits)
    # not emitted; p acts as 0.

    # Linear(128, C_pad)  (cast activations back to bf16 for the MXU)
    logits = jnp.dot(h.astype(w2_ref.dtype), w2_ref[...],
                     preferred_element_type=jnp.float32)
    logits = logits + b2_ref[...]                               # (Bm, C_pad) f32

    # Mask the padded class lanes so they don't pollute max / sum(exp).
    col = jax.lax.broadcasted_iota(jnp.int32, logits.shape, 1)
    logits = jnp.where(col < num_classes, logits, jnp.float32(-1e30))

    # LogSoftmax(dim=1), numerically stable.
    m = jnp.max(logits, axis=-1, keepdims=True)
    shifted = logits - m
    lse = jnp.log(jnp.sum(jnp.exp(shifted), axis=-1, keepdims=True))
    o_ref[...] = shifted - lse


def net_head(x, w1, b1, w2, b2, *, block_b=128):
    """x: (B, F) backbone features; returns (B, C) log-probabilities (f32)."""
    B, F = x.shape
    H = w1.shape[1]
    C = w2.shape[1]
    assert w1.shape == (F, H) and b1.shape == (1, H)
    assert w2.shape == (H, C) and b2.shape == (1, C)

    # Lane-dense padded class dimension (multiple of 128).
    C_pad = ((C + 127) // 128) * 128
    # Pad batch up to a multiple of the batch tile.
    n_blocks = pl.cdiv(B, block_b)
    Bp = n_blocks * block_b

    # bf16 inputs/weights (f32 accumulation inside the kernel), f32 biases.
    x_p = jnp.pad(x, ((0, Bp - B), (0, 0))).astype(jnp.bfloat16)
    w1_b = w1.astype(jnp.bfloat16)
    b1_f = b1.astype(jnp.float32)
    w2_p = jnp.pad(w2, ((0, 0), (0, C_pad - C))).astype(jnp.bfloat16)
    b2_p = jnp.pad(b2, ((0, 0), (0, C_pad - C))).astype(jnp.float32)

    kernel = functools.partial(_head_kernel, num_classes=C)

    bytes_accessed = (Bp * F * 2 + F * H * 2 + H * C_pad * 2   # bf16 inputs
                      + H * 4 + C_pad * 4                      # f32 biases
                      + Bp * C_pad * 4)                        # f32 output
    cost = pl.CostEstimate(
        flops=2 * Bp * (F * H + H * C_pad),
        transcendentals=Bp * C_pad,
        bytes_accessed=bytes_accessed,
    )

    out = pl.pallas_call(
        kernel,
        out_shape=jax.ShapeDtypeStruct((Bp, C_pad), jnp.float32),
        grid_spec=pltpu.PrefetchScalarGridSpec(
            num_scalar_prefetch=0,
            grid=(n_blocks,),
            in_specs=[
                pl.BlockSpec((block_b, F), lambda i: (i, 0)),   # x tile
                pl.BlockSpec((F, H), lambda i: (0, 0)),         # W1 resident
                pl.BlockSpec((1, H), lambda i: (0, 0)),         # b1 resident
                pl.BlockSpec((H, C_pad), lambda i: (0, 0)),     # W2 resident
                pl.BlockSpec((1, C_pad), lambda i: (0, 0)),     # b2 resident
            ],
            out_specs=pl.BlockSpec((block_b, C_pad), lambda i: (i, 0)),
        ),
        compiler_params=pltpu.CompilerParams(
            dimension_semantics=("parallel",),   # shards across v7x's 2 TCs
            vmem_limit_bytes=64 * 1024 * 1024,
        ),
        cost_estimate=cost,
    )(x_p, w1_b, b1_f, w2_p, b2_p)

    return out[:B, :C]


def _reference(x, w1, b1, w2, b2):
    """Pure-JAX reference with the same bf16-in / f32-accumulate recipe."""
    xb = x.astype(jnp.bfloat16)
    w1b = w1.astype(jnp.bfloat16)
    w2b = w2.astype(jnp.bfloat16)
    h = jnp.dot(xb, w1b, preferred_element_type=jnp.float32) + b1
    h = jnp.maximum(h, 0.0)
    logits = jnp.dot(h.astype(jnp.bfloat16), w2b,
                     preferred_element_type=jnp.float32) + b2
    return jax.nn.log_softmax(logits, axis=1)


if __name__ == "__main__":
    # Shapes consistent with the module's forward: backbone feature dim F
    # (= utils.get_num_outputs(params)), hidden 128, num_classes C. Batch is
    # large enough to exercise the batch grid (2 tiles of 128 rows).
    B, F, H, C = 256, 512, 128, 16

    key = jax.random.PRNGKey(0)
    kx, kw1, kb1, kw2, kb2 = jax.random.split(key, 5)

    # Deterministic parameter init (PyTorch-style uniform(-1/sqrt(fan_in), +)).
    x = jax.random.normal(kx, (B, F), dtype=jnp.float32)
    lim1 = 1.0 / jnp.sqrt(jnp.float32(F))
    w1 = jax.random.uniform(kw1, (F, H), jnp.float32, -lim1, lim1)
    b1 = jax.random.uniform(kb1, (1, H), jnp.float32, -lim1, lim1)
    lim2 = 1.0 / jnp.sqrt(jnp.float32(H))
    w2 = jax.random.uniform(kw2, (H, C), jnp.float32, -lim2, lim2)
    b2 = jax.random.uniform(kb2, (1, C), jnp.float32, -lim2, lim2)

    out = net_head(x, w1, b1, w2, b2, block_b=128)
    out = jax.block_until_ready(out)

    ref = _reference(x, w1, b1, w2, b2)
    assert out.shape == (B, C)
    assert jnp.allclose(out, ref, atol=1e-3, rtol=1e-3), "mismatch vs reference"

    print("KERNEL_OK")
</pallas_src>

<mosaic_0001>
module attributes {stable_mosaic.version = 11 : i64} {
  func.func @_head_kernel(%arg0: i32, %arg1: memref<128x512xbf16, #tpu.memory_space<vmem>>, %arg2: memref<512x128xbf16, #tpu.memory_space<vmem>>, %arg3: memref<1x128xf32, #tpu.memory_space<vmem>>, %arg4: memref<128x128xbf16, #tpu.memory_space<vmem>>, %arg5: memref<1x128xf32, #tpu.memory_space<vmem>>, %arg6: memref<128x128xf32, #tpu.memory_space<vmem>>) attributes {dimension_semantics = [#tpu.dimension_semantics<parallel>], iteration_bounds = array<i64: 2>, scalar_prefetch = 0 : i64, scratch_operands = 0 : i64, tpu.core_type = #tpu.core_type<tc>, window_params = [{transform_indices = @transform_0, window_bounds = array<i64: 128, 512>}, {pipeline_mode = #tpu.pipeline_mode<synchronous>, transform_indices = @transform_1, window_bounds = array<i64: 512, 128>}, {pipeline_mode = #tpu.pipeline_mode<synchronous>, transform_indices = @transform_2, window_bounds = array<i64: 1, 128>}, {pipeline_mode = #tpu.pipeline_mode<synchronous>, transform_indices = @transform_3, window_bounds = array<i64: 128, 128>}, {pipeline_mode = #tpu.pipeline_mode<synchronous>, transform_indices = @transform_4, window_bounds = array<i64: 1, 128>}, {transform_indices = @transform_5, window_bounds = array<i64: 128, 128>}]} {
    %c0 = arith.constant 0 : index
    %c0_0 = arith.constant 0 : index
    %0 = vector.load %arg1[%c0, %c0_0] : memref<128x512xbf16, #tpu.memory_space<vmem>>, vector<128x512xbf16>
    %c0_1 = arith.constant 0 : index
    %c0_2 = arith.constant 0 : index
    %1 = vector.load %arg2[%c0_1, %c0_2] : memref<512x128xbf16, #tpu.memory_space<vmem>>, vector<512x128xbf16>
    %cst = arith.constant dense<0.000000e+00> : vector<128x128xf32>
    %2 = tpu.matmul %0, %1, %cst {dimension_numbers = #tpu.dot_dimension_numbers<[1], [0], [0], [1], [0, 0, 1, 1], [], []>} : vector<128x512xbf16>, vector<512x128xbf16>, vector<128x128xf32> -> vector<128x128xf32>
    %c0_3 = arith.constant 0 : index
    %c0_4 = arith.constant 0 : index
    %3 = vector.load %arg3[%c0_3, %c0_4] : memref<1x128xf32, #tpu.memory_space<vmem>>, vector<1x128xf32>
    %4 = vector.broadcast %3 : vector<1x128xf32> to vector<128x128xf32>
    %5 = arith.addf %2, %4 : vector<128x128xf32>
    %cst_5 = arith.constant 0.000000e+00 : f32
    %6 = vector.broadcast %cst_5 : f32 to vector<128x128xf32>
    %7 = arith.maximumf %5, %6 : vector<128x128xf32>
    %8 = arith.truncf %7 : vector<128x128xf32> to vector<128x128xbf16>
    %c0_6 = arith.constant 0 : index
    %c0_7 = arith.constant 0 : index
    %9 = vector.load %arg4[%c0_6, %c0_7] : memref<128x128xbf16, #tpu.memory_space<vmem>>, vector<128x128xbf16>
    %cst_8 = arith.constant dense<0.000000e+00> : vector<128x128xf32>
    %10 = tpu.matmul %8, %9, %cst_8 {dimension_numbers = #tpu.dot_dimension_numbers<[1], [0], [0], [1], [0, 0, 1, 1], [], []>} : vector<128x128xbf16>, vector<128x128xbf16>, vector<128x128xf32> -> vector<128x128xf32>
    %c0_9 = arith.constant 0 : index
    %c0_10 = arith.constant 0 : index
    %11 = vector.load %arg5[%c0_9, %c0_10] : memref<1x128xf32, #tpu.memory_space<vmem>>, vector<1x128xf32>
    %12 = vector.broadcast %11 : vector<1x128xf32> to vector<128x128xf32>
    %13 = arith.addf %10, %12 : vector<128x128xf32>
    %14 = tpu.iota {dimensions = array<i32: 1>} : vector<128x128xi32>
    %c16_i32 = arith.constant 16 : i32
    %15 = vector.broadcast %c16_i32 : i32 to vector<128x128xi32>
    %16 = arith.cmpi slt, %14, %15 : vector<128x128xi32>
    %cst_11 = arith.constant -1.000000e+30 : f32
    %17 = vector.broadcast %cst_11 : f32 to vector<128x128xf32>
    %18 = arith.select %16, %13, %17 : vector<128x128xi1>, vector<128x128xf32>
    %cst_12 = arith.constant dense<0xFF800000> : vector<128xf32>
    %19 = vector.multi_reduction <maximumf>, %18, %cst_12 [1] : vector<128x128xf32> to vector<128xf32>
    %20 = vector.shape_cast %19 : vector<128xf32> to vector<128x1xf32>
    %21 = vector.broadcast %20 : vector<128x1xf32> to vector<128x128xf32>
    %22 = arith.subf %18, %21 : vector<128x128xf32>
    %23 = math.exp %22 : vector<128x128xf32>
    %cst_13 = arith.constant dense<0.000000e+00> : vector<128xf32>
    %24 = vector.multi_reduction <add>, %23, %cst_13 [1] : vector<128x128xf32> to vector<128xf32>
    %25 = vector.shape_cast %24 : vector<128xf32> to vector<128x1xf32>
    %26 = math.log %25 : vector<128x1xf32>
    %27 = vector.broadcast %26 : vector<128x1xf32> to vector<128x128xf32>
    %28 = arith.subf %22, %27 : vector<128x128xf32>
    %c0_14 = arith.constant 0 : index
    %c0_15 = arith.constant 0 : index
    %29 = vector.load %arg6[%c0_14, %c0_15] : memref<128x128xf32, #tpu.memory_space<vmem>>, vector<128x128xf32>
    tpu.vector_store %arg6[%c0_14, %c0_15], %28 {strides = array<i32>} : memref<128x128xf32, #tpu.memory_space<vmem>>, vector<128x128xf32>,
    return
  }
  func.func @transform_0(%arg0: i32) -> (i32, i32) {
    %c0_i32 = arith.constant 0 : i32
    %c0_i32_0 = arith.constant 0 : i32
    return %arg0, %c0_i32 : i32, i32
  }
  func.func @transform_1(%arg0: i32) -> (i32, i32) {
    %c0_i32 = arith.constant 0 : i32
    %c0_i32_0 = arith.constant 0 : i32
    %c0_i32_1 = arith.constant 0 : i32
    return %c0_i32, %c0_i32_0 : i32, i32
  }
  func.func @transform_2(%arg0: i32) -> (i32, i32) {
    %c0_i32 = arith.constant 0 : i32
    %c0_i32_0 = arith.constant 0 : i32
    %c0_i32_1 = arith.constant 0 : i32
    return %c0_i32, %c0_i32_0 : i32, i32
  }
  func.func @transform_3(%arg0: i32) -> (i32, i32) {
    %c0_i32 = arith.constant 0 : i32
    %c0_i32_0 = arith.constant 0 : i32
    %c0_i32_1 = arith.constant 0 : i32
    return %c0_i32, %c0_i32_0 : i32, i32
  }
  func.func @transform_4(%arg0: i32) -> (i32, i32) {
    %c0_i32 = arith.constant 0 : i32
    %c0_i32_0 = arith.constant 0 : i32
    %c0_i32_1 = arith.constant 0 : i32
    return %c0_i32, %c0_i32_0 : i32, i32
  }
  func.func @transform_5(%arg0: i32) -> (i32, i32) {
    %c0_i32 = arith.constant 0 : i32
    %c0_i32_0 = arith.constant 0 : i32
    return %arg0, %c0_i32 : i32, i32
  }
}

</mosaic_0001>

<bundles_post_ra>
// kernel: tpu_custom_call.1
= control target key start
LH: loop header
LB: loop body
LE: loop exit
PB: predicated region body
PF: predicated region fallthrough
CT: control target
= control target key end

     0   :  { %10 = vsyncpa [#allocation3], 0  ;;  %s2747_s0 = inlined_call_operand.hbm [shape: bf16[256,512], index: 0, kind: input, shape index: {}]   ;;  %s2748_s1 = inlined_call_operand.hbm [shape: bf16[512,128], index: 1, kind: input, shape index: {}]   ;;  %s2749_s2 = inlined_call_operand.hbm [shape: f32[1,128], index: 2, kind: input, shape index: {}]   ;;  %s2750_s3 = inlined_call_operand.hbm [shape: bf16[128,128], index: 3, kind: input, shape index: {}]   ;;  %s2751_s4 = inlined_call_operand.hbm [shape: f32[1,128], index: 4, kind: input, shape index: {}]   ;;  %s2752_s5 = inlined_call_operand.hbm [shape: f32[256,128], index: 5, kind: output, shape index: {}]  }
   0x1   :  { %12 = vsyncpa [#allocation3 + $0x1], 0 }
   0x2   :  { %13 = vsyncpa [#allocation6], 0 }
   0x3   :  { %14 = vsyncpa [#allocation9], 0 }
   0x4   :  { %15 = vsyncpa [#allocation4], 0 }
   0x5   :  { %17 = vsyncpa [#allocation4 + $0x1], 0  ;;  %s2259_s18 = smov 0   ;;  %s2261_s19 = smov 0  }
   0x6   :  { %s2263_s20 = smov 0   ;;  %s2265_s21 = smov 0  }
   0x7 LB: > { %s2280_s22 = sadd.s32 4294967295, %s2215_s21   ;;  %s1462_s23 = sadd.s32 4294967294, %s2215_s21   ;;  %s2215_s21 = sphi %s2265_s21, %s2775_s21   ;;  %s2211_s20 = sphi %s2263_s20, %s2774_s20   ;;  %s2207_s19 = sphi %s2261_s19, %s2773_s19   ;;  %s2203_s18 = sphi %s2259_s18, %s2772_s18  }
   0x8   : > { %p43_p0 = scmp.ne.s32.totalorder %s2207_s19, %s2203_s18  ;;  %p2753_p1 = scmp.eq.s32.totalorder %s2280_s22, 0 }
   0x9   : > { %p157_p3 = scmp.eq.s32.totalorder %s1462_s23, 1  ;;  %p1463_p5 = scmp.ge.s32.totalorder %s2215_s21, 1 }
   0xa   : > { %p2289_p4 = por %p2753_p1, %p43_p0  ;;  %p164_p7 = scmp.lt.s32.totalorder %s2215_s21, 3 }
   0xb   : > { %p2294_p6 = por %p157_p3, %p43_p0  ;;  %s2217_s27 = smov [#allocation5]  }
   0xc   : > { %s2756_s24 = scalar_select %p2289_p4, 1, 0 }
   0xd   : > { %s2757_s25 = scalar_select %p2294_p6, 1, 0 }
   0xe   : > { %p2299_p8 = pnand %p1463_p5, %p164_p7  ;;  %s176_s28 = sshll.u32 %s2217_s27, 4  ;;  %s2303_s28 = int_to_ptr.vmem [resolvable:$true] %s176_s28 }
   0xf   : > { %s2218_s30 = smov [#allocation8]   ;;  %s2219_s7 = smov [#allocation7]  }
  0x10   : > { %s2758_s26 = scalar_select %p2299_p8, 1, 0 }
  0x11   : > { %p1774_p9 = pneg %p2299_p8  ;;  %s200_s6 = sshll.u32 %s2218_s30, 4  ;;  %s2314_s6 = int_to_ptr.vmem [resolvable:$true] %s200_s6 }
  0x12   : > { %s2316_s8 = sshll.u32 %s2219_s7, 4  ;;  %s1999_s11 = scalar_lea.hbm %s2748_s1, 4096  ;;  %s191_s8 = int_to_ptr.vmem [resolvable:$true] %s2316_s8 }
  0x13   : > { %p2310_p11 = pnand %p1774_p9, %p2753_p1  ;;  %p2000_p12 = scmp.ne.s32.totalorder %s2748_s1, %s1999_s11 }
  0x14   : > { %p2006_p5 = scmp.lt.u32.totalorder %s1999_s11, %s2748_s1 }
  0x15   : > { %p2326_p13 = pneg %p2310_p11 }
  0x17   : > { %p2002_p0 = pnand %p2326_p13, %p2000_p12 }
  0x19   : > { %p2003_p3 = pneg %p2002_p0 }
  0x1b   : > { %p2008_p7 = pnand %p2006_p5, %p2003_p3 }
  0x1d   : > { %2011 = shalt.err (!%p2008_p7)
}
  0x1e   : > { %s2012_s17 = scalar_lea.vmem %s2303_s28, 4096  ;;  %p2020_p2 = scmp.lt.s32.totalorder %s2303_s28, %s2303_s28 }
  0x1f   : > { %p2013_p9 = scmp.ne.s32.totalorder %s2303_s28, %s2012_s17  ;;  %p2021_p6 = scmp.lt.s32.totalorder %s2012_s17, %s2012_s17 }
  0x21   : > { %p2015_p10 = pnand %p2013_p9, %p2326_p13  ;;  %p2022_p12 = por %p2021_p6, %p2020_p2 }
  0x23   : > { %p2016_p1 = pneg %p2015_p10 }
  0x25   : > { %p2023_p0 = pnand %p2022_p12, %p2016_p1 }
  0x27   : > { %2026 = shalt.err (!%p2023_p0)
}
  0x28   : > { %s2220_s23 = smov 64   ;;  %s2221_s27 = smov 4  }
  0x29   : > { %1777 = dma.hbm_to_vmem [thread:$0]  (!%p2310_p11), %s2748_s1, 4096, %s2303_s28, [#allocation6], %s2220_s23, %s2220_s23, %s2221_s27  }
  0x2a   : > { %s2027_s11 = scalar_lea.hbm %s2750_s3, 1024 }
  0x2b   : > { %p2028_p2 = scmp.ne.s32.totalorder %s2750_s3, %s2027_s11  ;;  %p2034_p10 = scmp.lt.u32.totalorder %s2027_s11, %s2750_s3 }
  0x2d   : > { %p2030_p1 = pnand %p2028_p2, %p2326_p13 }
  0x2f   : > { %p2031_p6 = pneg %p2030_p1 }
  0x31   : > { %p2036_p3 = pnand %p2034_p10, %p2031_p6 }
  0x33   : > { %2039 = shalt.err (!%p2036_p3)
}
  0x34   : > { %s2040_s28 = scalar_lea.vmem %s2314_s6, 1024  ;;  %p2048_p12 = scmp.lt.s32.totalorder %s2314_s6, %s2314_s6 }
  0x35   : > { %p2041_p5 = scmp.ne.s32.totalorder %s2314_s6, %s2040_s28  ;;  %p2049_p0 = scmp.lt.s32.totalorder %s2040_s28, %s2040_s28 }
  0x37   : > { %p2043_p7 = pnand %p2041_p5, %p2326_p13  ;;  %p2050_p2 = por %p2049_p0, %p2048_p12 }
  0x39   : > { %p2044_p9 = pneg %p2043_p7 }
  0x3b   : > { %p2051_p1 = pnand %p2050_p2, %p2044_p9 }
  0x3d   : > { %2054 = shalt.err (!%p2051_p1)
}
  0x3e   : > { %1783 = dma.hbm_to_vmem [thread:$0]  (!%p2310_p11), %s2750_s3, 1024, %s2314_s6, [#allocation9], %s2220_s23, %s2220_s23, %s2221_s27  }
  0x3f   : > { %s2055_s10 = scalar_lea.hbm %s2749_s2, 16 }
  0x40   : > { %p2056_p6 = scmp.ne.s32.totalorder %s2749_s2, %s2055_s10  ;;  %p2062_p5 = scmp.lt.u32.totalorder %s2055_s10, %s2749_s2 }
  0x42   : > { %p2058_p10 = pnand %p2056_p6, %p2326_p13 }
  0x44   : > { %p2059_p3 = pneg %p2058_p10 }
  0x46   : > { %p2064_p7 = pnand %p2062_p5, %p2059_p3 }
  0x48   : > { %2067 = shalt.err (!%p2064_p7)
}
  0x49   : > { %s2068_s16 = scalar_lea.vmem %s191_s8, 16  ;;  %s2075_s6 = scalar_lea.vmem %s191_s8, 32 }
  0x4a   : > { %p2069_p9 = scmp.ne.s32.totalorder %s191_s8, %s2068_s16  ;;  %p2076_p2 = scmp.lt.s32.totalorder %s191_s8, %s191_s8 }
  0x4b   : > { %p2077_p1 = scmp.lt.s32.totalorder %s2075_s6, %s2068_s16 }
  0x4c   : > { %p2071_p12 = pnand %p2069_p9, %p2326_p13 }
  0x4d   : > { %p2078_p4 = por %p2077_p1, %p2076_p2 }
  0x4e   : > { %p2072_p0 = pneg %p2071_p12 }
  0x50   : > { %p2079_p8 = pnand %p2078_p4, %p2072_p0 }
  0x52   : > { %2082 = shalt.err (!%p2079_p8)
}
  0x53   : > { %1780 = dma.hbm_to_vmem [thread:$0]  (!%p2310_p11), %s2749_s2, 16, %s191_s8, [#allocation6]  }
  0x54   : > { %s2222_s28 = smov [#allocation10]   ;;  %s2083_s9 = scalar_lea.hbm %s2751_s4, 16 }
  0x55   : > { %s214_s17 = sshll.u32 %s2222_s28, 4  ;;  %p2084_p6 = scmp.ne.s32.totalorder %s2751_s4, %s2083_s9  ;;  %s215_s17 = int_to_ptr.vmem [resolvable:$true] %s214_s17 }
  0x56   : > { %p2090_p10 = scmp.lt.u32.totalorder %s2083_s9, %s2751_s4 }
  0x57   : > { %p2086_p4 = pnand %p2084_p6, %p2326_p13 }
  0x59   : > { %p2087_p8 = pneg %p2086_p4 }
  0x5b   : > { %p2092_p3 = pnand %p2090_p10, %p2087_p8 }
  0x5d   : > { %2095 = shalt.err (!%p2092_p3)
}
  0x5e   : > { %s2096_s8 = scalar_lea.vmem %s215_s17, 16  ;;  %s2103_s15 = scalar_lea.vmem %s215_s17, 32 }
  0x5f   : > { %p2097_p5 = scmp.ne.s32.totalorder %s215_s17, %s2096_s8  ;;  %p2104_p12 = scmp.lt.s32.totalorder %s215_s17, %s215_s17 }
  0x60   : > { %p2105_p0 = scmp.lt.s32.totalorder %s2103_s15, %s2096_s8 }
  0x61   : > { %p2099_p7 = pnand %p2097_p5, %p2326_p13 }
  0x62   : > { %p2106_p2 = por %p2105_p0, %p2104_p12 }
  0x63   : > { %p2100_p9 = pneg %p2099_p7 }
  0x65   : > { %p2107_p1 = pnand %p2106_p2, %p2100_p9 }
  0x67   : > { %2110 = shalt.err (!%p2107_p1)
}
  0x68   : > { %1786 = dma.hbm_to_vmem [thread:$0]  (!%p2310_p11), %s2751_s4, 16, %s215_s17, [#allocation9]  }
  0x69   : > { %s2408_s14 = sadd.s32 1, %s2215_s21   ;;  %s30_s23 = sadd.s32 1, %s2211_s20 }
  0x6a   : > { %s27_s29 = ssub.s32 %s2215_s21, %s2408_s14  ;;  %p37_p13 = scmp.ne.s32.totalorder %s2211_s20, %s2207_s19 }
  0x6b   : > { %p28_p6 = scmp.eq.s32.totalorder %s27_s29, 0  ;;  %p38_p4 = scmp.eq.s32.totalorder %s2215_s21, 0 }
  0x6c   : > { %p2761_p8 = scmp.eq.s32.totalorder %s2280_s22, 1  ;;  %p1799_p3 = scmp.lt.s32.totalorder %s2215_s21, 2 }
  0x6d   : > { %s2424_s28 = scalar_select %p28_p6, %s2211_s20, %s30_s23  }
  0x6e   : > { %p2418_p10 = por %p2761_p8, %p37_p13  ;;  %p39_p5 = por %p38_p4, %p37_p13 }
  0x6f   : > { %s225_s30 = sand.u32 1, %s2211_s20   ;;  %s1560_s17 = sshll.u32 %s2215_s21, 12 }
  0x70   : > { %s1469_s7 = sshll.u32 %s225_s30, 8  ;;  %s2431_s11 = scalar_lea.hbm %s2747_s0, %s1560_s17 }
  0x71   : > { %s229_s12 = scalar_lea.vmem [#allocation2], %s1469_s7  ;;  %p2435_p11 = pnand %p1799_p3, %p39_p5 }
  0x72   : > { %s237_s13 = sshll.u32 %s229_s12, 4  ;;  %s2439_s15 = scalar_lea.sflag [#allocation3], %s225_s30  ;;  %s2433_s13 = int_to_ptr.vmem [resolvable:$true] %s237_s13 }
  0x73   : > { %s2111_s16 = scalar_lea.hbm %s2431_s11, 4096  ;;  %p2113_p9 = pneg %p2435_p11 }
  0x74   : > { %p2112_p7 = scmp.ne.s32.totalorder %s2431_s11, %s2111_s16  ;;  %s2116_s29 = scalar_lea.hbm %s2747_s0, 8192 }
  0x75   : > { %p2117_p2 = scmp.lt.u32.totalorder %s2431_s11, %s2747_s0  ;;  %p2118_p1 = scmp.lt.u32.totalorder %s2116_s29, %s2111_s16 }
  0x76   : > { %p2114_p12 = pnand %p2113_p9, %p2112_p7  ;;  %p2120_p6 = scmp.lt.u32.totalorder %s2111_s16, %s2431_s11 }
  0x77   : > { %p2119_p13 = por %p2118_p1, %p2117_p2 }
  0x78   : > { %p2115_p0 = pneg %p2114_p12 }
  0x79   : > { %p2121_p4 = por %p2120_p6, %p2119_p13 }
  0x7b   : > { %p2122_p8 = pnand %p2121_p4, %p2115_p0 }
  0x7d   : > { %2125 = shalt.err (!%p2122_p8)
}
  0x7e   : > { %s2126_s30 = scalar_lea.vmem %s2433_s13, 4096  ;;  %s2223_s9 = smov [#allocation2]  }
  0x7f   : > { %p2127_p3 = scmp.ne.s32.totalorder %s2433_s13, %s2126_s30  ;;  %s2131_s10 = sshll.u32 %s2223_s9, 4  ;;  %s2132_s10 = int_to_ptr.vmem [resolvable:$false] %s2131_s10 }
  0x80   : > { %s2133_s12 = scalar_lea.vmem %s2132_s10, 8192  ;;  %p2134_p12 = scmp.lt.s32.totalorder %s2433_s13, %s2132_s10 }
  0x81   : > { %p2129_p5 = pnand %p2127_p3, %p2113_p9  ;;  %p2135_p2 = scmp.lt.s32.totalorder %s2133_s12, %s2126_s30 }
  0x83   : > { %p2130_p7 = pneg %p2129_p5  ;;  %p2136_p1 = por %p2135_p2, %p2134_p12 }
  0x85   : > { %p2137_p13 = pnand %p2136_p1, %p2130_p7 }
  0x87   : > { %2140 = shalt.err (!%p2137_p13)
}
  0x88   : > { %s2224_s16 = smov 256   ;;  %s2225_s6 = smov 16  }
  0x89   : > { %1790 = dma.hbm_to_vmem [thread:$0]  (!%p2435_p11), %s2431_s11, 4096, %s2433_s13, %s2439_s15, %s2224_s16, %s2224_s16, %s2225_s6  }
  0x8a   : > { %p2764_p9 = scmp.ne.s32.totalorder %s2758_s26, 0 }
  0x8b   : > { %s2470_s23 = sand.u32 (!%p2764_p9), 1, %s2207_s19   ;;  %p2765_p0 = scmp.ne.s32.totalorder (!%p2764_p9), %s2756_s24, 0 }
  0x8c   : > { %249 = sbr.rel (%p2764_p9) target bundleno = 1021 (0x3fd), region = 40  ;;  %s1474_s29 = sshll.u32 (!%p2764_p9), %s2470_s23, 8 }
  0x8d   : > { %s252_s7 = scalar_lea.sflag (!%p2764_p9), [#allocation3], %s2470_s23  ;;  %s2474_s17 = scalar_lea.vmem (!%p2764_p9), [#allocation2], %s1474_s29 }
  0x93   : > { %2186 = dma.done.wait (%p2765_p0), %s252_s7, 4096  }
  0x94   : > { %2188 = vsyncadd (%p2765_p0), %s252_s7, 4294963200  ;;  %p2766_p11 = scmp.eq.s32.totalorder %s2280_s22, 0 }
  0x96   : > { %2190 = dma.done.wait (%p2766_p11), [#allocation6], 4112   ;;  %p2767_p6 = pmov %p2766_p11 }
  0x98   : > { %2192 = vsyncadd (%p2767_p6), [#allocation6], 4294963184  ;;  %p2768_p4 = pmov %p2767_p6 }
  0x9a   : > { %2194 = dma.done.wait (%p2768_p4), [#allocation9], 1040   ;;  %p2769_p8 = pmov %p2768_p4 }
  0x9b   : > { %v1847_v0 = vld [vmem:[#allocation5 + $0x40] sm:$0xff]   ;;  %v1851_v4 = vld [vmem:[#allocation5 + $0x48] sm:$0xff]   ;;  %v1855_v8 = vld [vmem:[#allocation5 + $0x50] sm:$0xff]   ;;  %s1479_s24 = sshll.u32 %s2470_s23, 7  ;;  %s1561_s11 = sshll.u32 %s2280_s22, 11 }
  0x9c   : > { %2196 = vsyncadd (%p2769_p8), [#allocation9], 4294966256  ;;  %v1848_v1 = vld [vmem:[#allocation5 + $0xc0] sm:$0xff]   ;;  %1562 = vmatprep.subr.bf16.mxu0 %v1847_v0  ;;  %v1852_v5 = vld [vmem:[#allocation5 + $0xc8] sm:$0xff]   ;;  %s2663_s26 = scalar_lea.vmem [#allocation11], %s1479_s24  ;;  %s2698_s30 = scalar_lea.hbm %s2752_s5, %s1561_s11 }
  0x9d   : > { %v1849_v2 = vld [vmem:[#allocation5] sm:$0xff]   ;;  %1626 = vmatprep.subr.bf16.mxu1 %v1848_v1  ;;  %v1853_v6 = vld [vmem:[#allocation5 + $0x8] sm:$0xff]   ;;  %v1856_v9 = vld [vmem:[#allocation5 + $0xd0] sm:$0xff]   ;;  %s1351_s13 = sshll.u32 %s2663_s26, 4  ;;  %s1338_s22 = scalar_lea.sflag [#allocation4], %s2470_s23  ;;  %s2700_s13 = int_to_ptr.vmem [resolvable:$true] %s1351_s13 }
  0x9e   : > { %v1850_v3 = vld [vmem:[#allocation5 + $0x80] sm:$0xff]   ;;  %1563 = vmatpush3.bf16.msra.mxu0 %v1849_v2  ;;  %v1854_v7 = vld [vmem:[#allocation5 + $0x88] sm:$0xff]   ;;  %v1857_v10 = vld [vmem:[#allocation5 + $0x10] sm:$0xff]   ;;  %s2141_s9 = scalar_lea.vmem %s2700_s13, 2048  ;;  %s2226_s10 = smov [#allocation11]  }
  0x9f   : > { %1627 = vmatpush3.bf16.msra.mxu1 %v1850_v3  ;;  %1564 = vmatprep.subr.bf16.mxu0 %v1851_v4  ;;  %v1858_v11 = vld [vmem:[#allocation5 + $0x90] sm:$0xff]   ;;  %v1859_v12 = vld [vmem:[#allocation5 + $0x58] sm:$0xff]   ;;  %v1863_v16 = vld [vmem:[#allocation5 + $0x60] sm:$0xff]   ;;  %p2142_p3 = scmp.ne.s32.totalorder %s2700_s13, %s2141_s9  ;;  %s2145_s12 = sshll.u32 %s2226_s10, 4  ;;  %s2146_s12 = int_to_ptr.vmem [resolvable:$false] %s2145_s12 }
  0xa0   : > { %1628 = vmatprep.subr.bf16.mxu1 %v1852_v5  ;;  %v1860_v13 = vld [vmem:[#allocation5 + $0xd8] sm:$0xff]   ;;  %v1864_v17 = vld [vmem:[#allocation5 + $0xe0] sm:$0xff]   ;;  %v1867_v20 = vld [vmem:[#allocation5 + $0x68] sm:$0xff]   ;;  %s2147_s16 = scalar_lea.vmem %s2146_s12, 4096  ;;  %p2148_p12 = scmp.lt.s32.totalorder %s2700_s13, %s2146_s12 }
  0xa1   : > { %v1861_v14 = vld [vmem:[#allocation5 + $0x18] sm:$0xff]   ;;  %v1865_v18 = vld [vmem:[#allocation5 + $0x20] sm:$0xff]   ;;  %v1868_v21 = vld [vmem:[#allocation5 + $0xe8] sm:$0xff]   ;;  %p2143_p5 = pnand %p2142_p3, %p2418_p10  ;;  %p2149_p2 = scmp.lt.s32.totalorder %s2147_s16, %s2141_s9 }
  0xa2   : > { %1565 = vmatpush3.bf16.msra.mxu0 %v1853_v6  ;;  %v1862_v15 = vld [vmem:[#allocation5 + $0x98] sm:$0xff]   ;;  %v1866_v19 = vld [vmem:[#allocation5 + $0xa0] sm:$0xff]   ;;  %v1869_v22 = vld [vmem:[#allocation5 + $0x28] sm:$0xff]  }
  0xa3   : > { %1629 = vmatpush3.bf16.msra.mxu1 %v1854_v7  ;;  %1566 = vmatprep.subr.bf16.mxu0 %v1855_v8  ;;  %v1870_v23 = vld [vmem:[#allocation5 + $0xa8] sm:$0xff]   ;;  %v1871_v24 = vld [vmem:[#allocation5 + $0x70] sm:$0xff]   ;;  %v1875_v28 = vld [vmem:[#allocation5 + $0x78] sm:$0xff]   ;;  %p2144_p7 = pneg %p2143_p5  ;;  %p2150_p1 = por %p2149_p2, %p2148_p12 }
  0xa4   : > { %1630 = vmatprep.subr.bf16.mxu1 %v1856_v9  ;;  %v1872_v25 = vld [vmem:[#allocation5 + $0xf0] sm:$0xff]   ;;  %v1876_v29 = vld [vmem:[#allocation5 + $0xf8] sm:$0xff]   ;;  %v1927_v47 = vld [vmem:[#allocation8] sm:$0xff]  }
  0xa5   : > { %v1873_v26 = vld [vmem:[#allocation5 + $0x30] sm:$0xff]   ;;  %v1877_v30 = vld [vmem:[#allocation5 + $0x38] sm:$0xff]   ;;  %v1931_v4 = vld [vmem:[#allocation8 + $0x20] sm:$0xff]   ;;  %p2151_p13 = pnand %p2150_p1, %p2144_p7 }
  0xa6   : > { %1567 = vmatpush3.bf16.msra.mxu0 %v1857_v10  ;;  %v1874_v27 = vld [vmem:[#allocation5 + $0xb0] sm:$0xff]   ;;  %v1878_v31 = vld [vmem:[#allocation5 + $0xb8] sm:$0xff]   ;;  %v2520_v10 = vld [vmem:[#allocation7] ss:$0 sm:$0xff] }
  0xa7   : > { %1631 = vmatpush3.bf16.msra.mxu1 %v1858_v11  ;;  %1568 = vmatprep.subr.bf16.mxu0 %v1859_v12  ;;  %v1879_v32 = vld [vmem:[%s2474_s17] ss:$16 sps:$4 sm:$0xff]   ;;  %v1881_v33 = vld [vmem:[%s2474_s17 + $0x4] ss:$16 sps:$4 sm:$0xff]   ;;  %v1882_v34 = vld [vmem:[%s2474_s17 + $0x8] ss:$16 sps:$4 sm:$0xff]  }
  0xa8   : > { %1632 = vmatprep.subr.bf16.mxu1 %v1860_v13  ;;  %v1884_v35 = vld [vmem:[%s2474_s17 + $0xc] ss:$16 sps:$4 sm:$0xff]   ;;  %788 = vmatprep.mubr.bf16.mxu0 %v1881_v33  ;;  %v1885_v36 = vld [vmem:[%s2474_s17 + $0x24] ss:$16 sps:$4 sm:$0xff]   ;;  %v1889_v38 = vld [vmem:[%s2474_s17 + $0x20] ss:$16 sps:$4 sm:$0xff]  }
  0xa9   : > { %885 = vmatprep.mubr.bf16.mxu1 %v1884_v35  ;;  %v1887_v37 = vld [vmem:[%s2474_s17 + $0x2c] ss:$16 sps:$4 sm:$0xff]   ;;  %v1890_v39 = vld [vmem:[%s2474_s17 + $0x28] ss:$16 sps:$4 sm:$0xff]   ;;  %v1891_v40 = vld [vmem:[%s2474_s17 + $0x44] ss:$16 sps:$4 sm:$0xff]  }
  0xaa   : > { %1569 = vmatpush3.bf16.msra.mxu0 %v1861_v14  ;;  %v1893_v41 = vld [vmem:[%s2474_s17 + $0x4c] ss:$16 sps:$4 sm:$0xff]   ;;  %v1895_v42 = vld [vmem:[%s2474_s17 + $0x40] ss:$16 sps:$4 sm:$0xff]   ;;  %v1896_v43 = vld [vmem:[%s2474_s17 + $0x48] ss:$16 sps:$4 sm:$0xff]  }
  0xab   : > { %1633 = vmatpush3.bf16.msra.mxu1 %v1862_v15  ;;  %1570 = vmatprep.subr.bf16.mxu0 %v1863_v16  ;;  %v1897_v44 = vld [vmem:[%s2474_s17 + $0x64] ss:$16 sps:$4 sm:$0xff]   ;;  %v1899_v45 = vld [vmem:[%s2474_s17 + $0x6c] ss:$16 sps:$4 sm:$0xff]   ;;  %v1901_v46 = vld [vmem:[%s2474_s17 + $0x60] ss:$16 sps:$4 sm:$0xff]  }
  0xac   : > { %1634 = vmatprep.subr.bf16.mxu1 %v1864_v17  ;;  %v1902_v48 = vld [vmem:[%s2474_s17 + $0x68] ss:$16 sps:$4 sm:$0xff]   ;;  %v1903_v49 = vld [vmem:[%s2474_s17 + $0x84] ss:$16 sps:$4 sm:$0xff]   ;;  %v1905_v51 = vld [vmem:[%s2474_s17 + $0x8c] ss:$16 sps:$4 sm:$0xff]  }
  0xad   : > { %v1928_v50 = vld [vmem:[#allocation8 + $0x8] sm:$0xff]   ;;  %v1929_v52 = vld [vmem:[#allocation8 + $0x10] sm:$0xff]   ;;  %v1930_v3 = vld [vmem:[#allocation8 + $0x18] sm:$0xff]  }
  0xae   : > { %1571 = vmatpush3.bf16.msra.mxu0 %v1865_v18  ;;  %v1907_v53 = vld [vmem:[%s2474_s17 + $0x80] ss:$16 sps:$4 sm:$0xff]   ;;  %v1908_v54 = vld [vmem:[%s2474_s17 + $0x88] ss:$16 sps:$4 sm:$0xff]   ;;  %v1909_v55 = vld [vmem:[%s2474_s17 + $0xa4] ss:$16 sps:$4 sm:$0xff]  }
  0xaf   : > { %1635 = vmatpush3.bf16.msra.mxu1 %v1866_v19  ;;  %1572 = vmatprep.subr.bf16.mxu0 %v1867_v20  ;;  %v1911_v56 = vld [vmem:[%s2474_s17 + $0xac] ss:$16 sps:$4 sm:$0xff]   ;;  %v1913_v57 = vld [vmem:[%s2474_s17 + $0xa0] ss:$16 sps:$4 sm:$0xff]   ;;  %v1914_v58 = vld [vmem:[%s2474_s17 + $0xa8] ss:$16 sps:$4 sm:$0xff]  }
  0xb0   : > { %1636 = vmatprep.subr.bf16.mxu1 %v1868_v21  ;;  %v1915_v59 = vld [vmem:[%s2474_s17 + $0xc4] ss:$16 sps:$4 sm:$0xff]   ;;  %v1917_v60 = vld [vmem:[%s2474_s17 + $0xcc] ss:$16 sps:$4 sm:$0xff]   ;;  %v1919_v61 = vld [vmem:[%s2474_s17 + $0xc0] ss:$16 sps:$4 sm:$0xff]  }
  0xb1   : > { %v1920_v62 = vld [vmem:[%s2474_s17 + $0xc8] ss:$16 sps:$4 sm:$0xff]   ;;  %v1921_v63 = vld [vmem:[%s2474_s17 + $0xe4] ss:$16 sps:$4 sm:$0xff]   ;;  %v1923_v0 = vld [vmem:[%s2474_s17 + $0xec] ss:$16 sps:$4 sm:$0xff]  }
  0xb2   : > { %1573 = vmatpush3.bf16.msra.mxu0 %v1869_v22  ;;  %v1925_v1 = vld [vmem:[%s2474_s17 + $0xe0] ss:$16 sps:$4 sm:$0xff]   ;;  %v1926_v2 = vld [vmem:[%s2474_s17 + $0xe8] ss:$16 sps:$4 sm:$0xff]  }
  0xb3   : > { %1637 = vmatpush3.bf16.msra.mxu1 %v1870_v23  ;;  %1574 = vmatprep.subr.bf16.mxu0 %v1871_v24  ;;  %v1932_v5 = vld [vmem:[#allocation8 + $0x28] sm:$0xff]   ;;  %v1933_v6 = vld [vmem:[#allocation8 + $0x30] sm:$0xff]   ;;  %v1934_v7 = vld [vmem:[#allocation8 + $0x38] sm:$0xff]  }
  0xb4   : > { %1638 = vmatprep.subr.bf16.mxu1 %v1872_v25 }
  0xb6   : > { %1575 = vmatpush3.bf16.msra.mxu0 %v1873_v26 }
  0xb7   : > { %1639 = vmatpush3.bf16.msra.mxu1 %v1874_v27  ;;  %1576 = vmatprep.subr.bf16.mxu0 %v1875_v28 }
  0xb8   : > { %1640 = vmatprep.subr.bf16.mxu1 %v1876_v29 }
  0xba   : > { %1577 = vmatpush3.bf16.msra.mxu0 %v1877_v30 }
  0xbb   : > { %1641 = vmatpush3.bf16.msra.mxu1 %v1878_v31  ;;  %1706 = vmatprep.subr.bf16.mxu0 %v1927_v47 }
  0xbc   : > { %1738 = vmatprep.subr.bf16.mxu1 %v1927_v47 }
  0xbd   : > { %789 = vmatmul.mubr.bf16.vlgmr.msra.gmra.mrb[0].mxu0 %v1879_v32 }
  0xbe   : > { %886 = vmatmul.mubr.bf16.vlgmr.msra.gmra.mrb[0].mxu1 %v1882_v34  ;;  %796 = vmatprep.mubr.bf16.mxu0 %v1885_v36 }
  0xbf   : > { %893 = vmatprep.mubr.bf16.mxu1 %v1887_v37  ;;  %1707 = vmatpush3.bf16.msra.mxu0 %v1927_v47 }
  0xc0   : > { %1746 = vmatpush3.bf16.msra.mxu1 %v1927_v47  ;;  %1708 = vmatprep.subr.bf16.mxu0 %v1928_v50 }
  0xc1   : > { %1739 = vmatprep.subr.bf16.mxu1 %v1928_v50 }
  0xc3   : > { %1709 = vmatpush3.bf16.msra.mxu0 %v1928_v50 }
  0xc4   : > { %1710 = vmatprep.subr.bf16.mxu0 %v1929_v52  ;;  %1747 = vmatpush3.bf16.msra.mxu1 %v1928_v50 }
  0xc5   : > { %797 = vmatmul.mubr.bf16.gmra.mrb[4].mxu0 %v1889_v38  ;;  %1740 = vmatprep.subr.bf16.mxu1 %v1929_v52 }
  0xc6   : > { %894 = vmatmul.mubr.bf16.gmra.mrb[4].mxu1 %v1890_v39  ;;  %804 = vmatprep.mubr.bf16.mxu0 %v1891_v40 }
  0xc7   : > { %901 = vmatprep.mubr.bf16.mxu1 %v1893_v41  ;;  %1711 = vmatpush3.bf16.msra.mxu0 %v1929_v52 }
  0xc8   : > { %1748 = vmatpush3.bf16.msra.mxu1 %v1929_v52  ;;  %1712 = vmatprep.subr.bf16.mxu0 %v1930_v3 }
  0xc9   : > { %1741 = vmatprep.subr.bf16.mxu1 %v1930_v3 }
  0xcb   : > { %1713 = vmatpush3.bf16.msra.mxu0 %v1930_v3 }
  0xcc   : > { %1749 = vmatpush3.bf16.msra.mxu1 %v1930_v3  ;;  %1714 = vmatprep.subr.bf16.mxu0 %v1931_v4 }
  0xcd   : > { %805 = vmatmul.mubr.bf16.gmra.mrb[8].mxu0 %v1895_v42  ;;  %1742 = vmatprep.subr.bf16.mxu1 %v1931_v4 }
  0xce   : > { %902 = vmatmul.mubr.bf16.gmra.mrb[8].mxu1 %v1896_v43  ;;  %812 = vmatprep.mubr.bf16.mxu0 %v1897_v44 }
  0xcf   : > { %909 = vmatprep.mubr.bf16.mxu1 %v1899_v45  ;;  %1715 = vmatpush3.bf16.msra.mxu0 %v1931_v4 }
  0xd0   : > { %1750 = vmatpush3.bf16.msra.mxu1 %v1931_v4  ;;  %1716 = vmatprep.subr.bf16.mxu0 %v1932_v5 }
  0xd1   : > { %1743 = vmatprep.subr.bf16.mxu1 %v1932_v5 }
  0xd3   : > { %1717 = vmatpush3.bf16.msra.mxu0 %v1932_v5 }
  0xd4   : > { %1751 = vmatpush3.bf16.msra.mxu1 %v1932_v5  ;;  %1718 = vmatprep.subr.bf16.mxu0 %v1933_v6 }
  0xd5   : > { %813 = vmatmul.mubr.bf16.gmra.mrb[12].mxu0 %v1901_v46  ;;  %1744 = vmatprep.subr.bf16.mxu1 %v1933_v6 }
  0xd6   : > { %910 = vmatmul.mubr.bf16.gmra.mrb[12].mxu1 %v1902_v48  ;;  %820 = vmatprep.mubr.bf16.mxu0 %v1903_v49 }
  0xd7   : > { %917 = vmatprep.mubr.bf16.mxu1 %v1905_v51  ;;  %1719 = vmatpush3.bf16.msra.mxu0 %v1933_v6 }
  0xd8   : > { %1752 = vmatpush3.bf16.msra.mxu1 %v1933_v6  ;;  %1720 = vmatprep.subr.bf16.mxu0 %v1934_v7 }
  0xd9   : > { %1745 = vmatprep.subr.bf16.mxu1 %v1934_v7 }
  0xdb   : > { %1721 = vmatpush3.bf16.msra.mxu0 %v1934_v7 }
  0xdc   : > { %1753 = vmatpush3.bf16.msra.mxu1 %v1934_v7 }
  0xdd   : > { %821 = vmatmul.mubr.bf16.gmra.mrb[16].mxu0 %v1907_v53 }
  0xde   : > { %918 = vmatmul.mubr.bf16.gmra.mrb[16].mxu1 %v1908_v54  ;;  %828 = vmatprep.mubr.bf16.mxu0 %v1909_v55 }
  0xdf   : > { %925 = vmatprep.mubr.bf16.mxu1 %v1911_v56 }
  0xe5   : > { %829 = vmatmul.mubr.bf16.gmra.mrb[20].mxu0 %v1913_v57 }
  0xe6   : > { %926 = vmatmul.mubr.bf16.gmra.mrb[20].mxu1 %v1914_v58  ;;  %836 = vmatprep.mubr.bf16.mxu0 %v1915_v59 }
  0xe7   : > { %933 = vmatprep.mubr.bf16.mxu1 %v1917_v60 }
  0xed   : > { %837 = vmatmul.mubr.bf16.gmra.mrb[24].mxu0 %v1919_v61 }
  0xee   : > { %934 = vmatmul.mubr.bf16.gmra.mrb[24].mxu1 %v1920_v62  ;;  %844 = vmatprep.mubr.bf16.mxu0 %v1921_v63 }
  0xef   : > { %941 = vmatprep.mubr.bf16.mxu1 %v1923_v0 }
  0xf5   : > { %845 = vmatmul.mubr.bf16.gmra.mrb[28].mxu0 %v1925_v1 }
  0xf6   : > { %942 = vmatmul.mubr.bf16.gmra.mrb[28].mxu1 %v1926_v2 }
 0x190   : > { %v1578_v8 = vpop.f32.mrb[0].mxu0 }
 0x191   : > { %v1642_v9 = vpop.f32.mrb[0].mxu1  ;;  %v1579_v11 = vpop.f32.mrb[1].mxu0 }
 0x192   : > { %v1580_v12 = vadd.f32 %v1579_v11, %v1578_v8  ;;  %v1643_v13 = vpop.f32.mrb[1].mxu1  ;;  %v1581_v14 = vpop.f32.mrb[2].mxu0 }
 0x193   : > { %v1644_v15 = vadd.f32 %v1643_v13, %v1642_v9  ;;  %v1645_v16 = vpop.f32.mrb[2].mxu1  ;;  %v1582_v17 = vpop.f32.mrb[3].mxu0 }
 0x194   : > { %v791_v18 = vadd.f32 %v1580_v12, %v2520_v10  ;;  %v1583_v19 = vadd.f32 %v1582_v17, %v1581_v14  ;;  %v1646_v20 = vpop.f32.mrb[3].mxu1 }
 0x195   : > { %v1647_v21 = vadd.f32 %v1646_v20, %v1645_v16 }
 0x196   : > { %v888_v22 = vadd.f32 %v1644_v15, %v791_v18  ;;  %v794_v23 = vadd.f32 %v1583_v19, %v2520_v10 }
 0x198   : > { %v891_v24 = vadd.f32 %v1647_v21, %v794_v23  ;;  %v1584_v25 = vpop.f32.mrb[4].mxu0  ;;  %v950_v28 = vmax.f32 %v888_v22, 0.0 }
 0x199   : > { %v1648_v26 = vpop.f32.mrb[4].mxu1  ;;  %v1585_v27 = vpop.f32.mrb[5].mxu0 }
 0x19a   : > { %v951_v29 = vmax.f32 %v891_v24, 0.0  ;;  %v1586_v30 = vadd.f32 %v1585_v27, %v1584_v25  ;;  %v1649_v31 = vpop.f32.mrb[5].mxu1  ;;  %v1587_v32 = vpop.f32.mrb[6].mxu0 }
 0x19b   : > { %v1650_v33 = vadd.f32 %v1649_v31, %v1648_v26  ;;  %v1651_v34 = vpop.f32.mrb[6].mxu1  ;;  %v1588_v35 = vpop.f32.mrb[7].mxu0 }
 0x19c   : > { %v799_v36 = vadd.f32 %v1586_v30, %v2520_v10  ;;  %v1589_v37 = vadd.f32 %v1588_v35, %v1587_v32  ;;  %v1652_v38 = vpop.f32.mrb[7].mxu1  ;;  %v966_v39 = vpack.c.bf16 %v951_v29, %v950_v28 }
 0x19d   : > { %v1653_v40 = vadd.f32 %v1652_v38, %v1651_v34 }
 0x19e   : > { %v896_v41 = vadd.f32 %v1650_v33, %v799_v36  ;;  %v802_v42 = vadd.f32 %v1589_v37, %v2520_v10  ;;  %1722 = vmatprep.mubr.bf16.mxu0 %v966_v39 }
 0x1a0   : > { %v899_v43 = vadd.f32 %v1653_v40, %v802_v42  ;;  %v1590_v44 = vpop.f32.mrb[8].mxu0  ;;  %v952_v47 = vmax.f32 %v896_v41, 0.0 }
 0x1a1   : > { %v1654_v45 = vpop.f32.mrb[8].mxu1  ;;  %v1591_v46 = vpop.f32.mrb[9].mxu0 }
 0x1a2   : > { %v953_v48 = vmax.f32 %v899_v43, 0.0  ;;  %v1592_v49 = vadd.f32 %v1591_v46, %v1590_v44  ;;  %v1655_v50 = vpop.f32.mrb[9].mxu1  ;;  %v1593_v51 = vpop.f32.mrb[10].mxu0 }
 0x1a3   : > { %v1656_v52 = vadd.f32 %v1655_v50, %v1654_v45  ;;  %v1657_v53 = vpop.f32.mrb[10].mxu1  ;;  %v1594_v54 = vpop.f32.mrb[11].mxu0 }
 0x1a4   : > { %v967_v55 = vpack.c.bf16 %v953_v48, %v952_v47  ;;  %v807_v56 = vadd.f32 %v1592_v49, %v2520_v10  ;;  %v1595_v57 = vadd.f32 %v1594_v54, %v1593_v51  ;;  %v1658_v58 = vpop.f32.mrb[11].mxu1 }
 0x1a5   : > { %v1659_v59 = vadd.f32 %v1658_v58, %v1657_v53 }
 0x1a6   : > { %v904_v60 = vadd.f32 %v1656_v52, %v807_v56  ;;  %v810_v61 = vadd.f32 %v1595_v57, %v2520_v10  ;;  %1723 = vmatmul.mubr.bf16.vlgmr.msra.gmra.mrb[32].mxu0 %v967_v55 }
 0x1a8   : > { %v907_v62 = vadd.f32 %v1659_v59, %v810_v61  ;;  %v1596_v63 = vpop.f32.mrb[12].mxu0  ;;  %v954_v2 = vmax.f32 %v904_v60, 0.0 }
 0x1a9   : > { %v1660_v0 = vpop.f32.mrb[12].mxu1  ;;  %v1597_v1 = vpop.f32.mrb[13].mxu0 }
 0x1aa   : > { %v955_v3 = vmax.f32 %v907_v62, 0.0  ;;  %v1598_v4 = vadd.f32 %v1597_v1, %v1596_v63  ;;  %v1661_v5 = vpop.f32.mrb[13].mxu1  ;;  %v1599_v6 = vpop.f32.mrb[14].mxu0 }
 0x1ab   : > { %v1662_v7 = vadd.f32 %v1661_v5, %v1660_v0  ;;  %v1663_v8 = vpop.f32.mrb[14].mxu1  ;;  %v1600_v9 = vpop.f32.mrb[15].mxu0 }
 0x1ac   : > { %v815_v11 = vadd.f32 %v1598_v4, %v2520_v10  ;;  %v1601_v12 = vadd.f32 %v1600_v9, %v1599_v6  ;;  %v1664_v13 = vpop.f32.mrb[15].mxu1  ;;  %v968_v14 = vpack.c.bf16 %v955_v3, %v954_v2 }
 0x1ad   : > { %v1665_v15 = vadd.f32 %v1664_v13, %v1663_v8 }
 0x1ae   : > { %v912_v16 = vadd.f32 %v1662_v7, %v815_v11  ;;  %v818_v17 = vadd.f32 %v1601_v12, %v2520_v10  ;;  %1726 = vmatprep.mubr.bf16.mxu0 %v968_v14 }
 0x1b0   : > { %v915_v18 = vadd.f32 %v1665_v15, %v818_v17  ;;  %v1602_v19 = vpop.f32.mrb[16].mxu0  ;;  %v956_v22 = vmax.f32 %v912_v16, 0.0 }
 0x1b1   : > { %v1666_v20 = vpop.f32.mrb[16].mxu1  ;;  %v1603_v21 = vpop.f32.mrb[17].mxu0 }
 0x1b2   : > { %v957_v23 = vmax.f32 %v915_v18, 0.0  ;;  %v1604_v24 = vadd.f32 %v1603_v21, %v1602_v19  ;;  %v1667_v25 = vpop.f32.mrb[17].mxu1  ;;  %v1605_v26 = vpop.f32.mrb[18].mxu0 }
 0x1b3   : > { %v1668_v27 = vadd.f32 %v1667_v25, %v1666_v20  ;;  %v1669_v28 = vpop.f32.mrb[18].mxu1  ;;  %v1606_v29 = vpop.f32.mrb[19].mxu0 }
 0x1b4   : > { %v823_v30 = vadd.f32 %v1604_v24, %v2520_v10  ;;  %v1607_v31 = vadd.f32 %v1606_v29, %v1605_v26  ;;  %v1670_v32 = vpop.f32.mrb[19].mxu1  ;;  %v969_v33 = vpack.c.bf16 %v957_v23, %v956_v22 }
 0x1b5   : > { %v1671_v34 = vadd.f32 %v1670_v32, %v1669_v28 }
 0x1b6   : > { %v920_v35 = vadd.f32 %v1668_v27, %v823_v30  ;;  %v826_v36 = vadd.f32 %v1607_v31, %v2520_v10  ;;  %1727 = vmatmul.mubr.bf16.gmra.mrb[36].mxu0 %v969_v33 }
 0x1b8   : > { %v923_v37 = vadd.f32 %v1671_v34, %v826_v36  ;;  %v1608_v38 = vpop.f32.mrb[20].mxu0  ;;  %v958_v41 = vmax.f32 %v920_v35, 0.0  ;;  %v1142_v35 = vlaneseq }
 0x1b9   : > { %v1672_v39 = vpop.f32.mrb[20].mxu1  ;;  %v1609_v40 = vpop.f32.mrb[21].mxu0 }
 0x1ba   : > { %v959_v42 = vmax.f32 %v923_v37, 0.0  ;;  %v1610_v43 = vadd.f32 %v1609_v40, %v1608_v38  ;;  %v1673_v44 = vpop.f32.mrb[21].mxu1  ;;  %v1611_v45 = vpop.f32.mrb[22].mxu0  ;;  %v2538_v36 = vand.u32 127, %v1142_v35  ;;  %v1545_v37 = vld [vmem:[#allocation10] ss:$0 sm:$0xff] }
 0x1bb   : > { %v1674_v46 = vadd.f32 %v1673_v44, %v1672_v39  ;;  %v1675_v47 = vpop.f32.mrb[22].mxu1  ;;  %v1612_v48 = vpop.f32.mrb[23].mxu0 }
 0x1bc   : > { %v831_v49 = vadd.f32 %v1610_v43, %v2520_v10  ;;  %v1613_v50 = vadd.f32 %v1612_v48, %v1611_v45  ;;  %v1676_v51 = vpop.f32.mrb[23].mxu1  ;;  %v970_v52 = vpack.c.bf16 %v959_v42, %v958_v41  ;;  %vm1144_vm0 = vcmp.lt.s32.totalorder %v2538_v36, 16 }
 0x1bd   : > { %v1677_v53 = vadd.f32 %v1676_v51, %v1675_v47 }
 0x1be   : > { %v928_v54 = vadd.f32 %v1674_v46, %v831_v49  ;;  %v834_v55 = vadd.f32 %v1613_v50, %v2520_v10  ;;  %1730 = vmatprep.mubr.bf16.mxu1 %v970_v52 }
 0x1c0   : > { %v931_v56 = vadd.f32 %v1677_v53, %v834_v55  ;;  %v1614_v57 = vpop.f32.mrb[24].mxu0  ;;  %v960_v60 = vmax.f32 %v928_v54, 0.0 }
 0x1c1   : > { %v1678_v58 = vpop.f32.mrb[24].mxu1  ;;  %v1615_v59 = vpop.f32.mrb[25].mxu0 }
 0x1c2   : > { %v961_v61 = vmax.f32 %v931_v56, 0.0  ;;  %v1616_v62 = vadd.f32 %v1615_v59, %v1614_v57  ;;  %v1679_v63 = vpop.f32.mrb[25].mxu1  ;;  %v1617_v0 = vpop.f32.mrb[26].mxu0 }
 0x1c3   : > { %v1680_v1 = vadd.f32 %v1679_v63, %v1678_v58  ;;  %v1681_v2 = vpop.f32.mrb[26].mxu1  ;;  %v1618_v3 = vpop.f32.mrb[27].mxu0 }
 0x1c4   : > { %v971_v4 = vpack.c.bf16 %v961_v61, %v960_v60  ;;  %v839_v5 = vadd.f32 %v1616_v62, %v2520_v10  ;;  %v1619_v6 = vadd.f32 %v1618_v3, %v1617_v0  ;;  %v1682_v7 = vpop.f32.mrb[27].mxu1 }
 0x1c5   : > { %v1683_v8 = vadd.f32 %v1682_v7, %v1681_v2 }
 0x1c6   : > { %v936_v9 = vadd.f32 %v1680_v1, %v839_v5  ;;  %v842_v11 = vadd.f32 %v1619_v6, %v2520_v10  ;;  %1731 = vmatmul.mubr.bf16.vlgmr.msra.gmra.mrb[32].mxu1 %v971_v4 }
 0x1c8   : > { %v939_v12 = vadd.f32 %v1683_v8, %v842_v11  ;;  %v1620_v13 = vpop.f32.mrb[28].mxu0  ;;  %v962_v16 = vmax.f32 %v936_v9, 0.0 }
 0x1c9   : > { %v1684_v14 = vpop.f32.mrb[28].mxu1  ;;  %v1621_v15 = vpop.f32.mrb[29].mxu0 }
 0x1ca   : > { %v963_v17 = vmax.f32 %v939_v12, 0.0  ;;  %v1622_v18 = vadd.f32 %v1621_v15, %v1620_v13  ;;  %v1685_v19 = vpop.f32.mrb[29].mxu1  ;;  %v1623_v20 = vpop.f32.mrb[30].mxu0 }
 0x1cb   : > { %v1686_v21 = vadd.f32 %v1685_v19, %v1684_v14  ;;  %v1687_v22 = vpop.f32.mrb[30].mxu1  ;;  %v1624_v23 = vpop.f32.mrb[31].mxu0 }
 0x1cc   : > { %v847_v24 = vadd.f32 %v1622_v18, %v2520_v10  ;;  %v1625_v25 = vadd.f32 %v1624_v23, %v1623_v20  ;;  %v1688_v26 = vpop.f32.mrb[31].mxu1  ;;  %v972_v27 = vpack.c.bf16 %v963_v17, %v962_v16 }
 0x1cd   : > { %v1689_v28 = vadd.f32 %v1688_v26, %v1687_v22 }
 0x1ce   : > { %v944_v29 = vadd.f32 %v1686_v21, %v847_v24  ;;  %v850_v30 = vadd.f32 %v1625_v25, %v2520_v10  ;;  %1734 = vmatprep.mubr.bf16.mxu1 %v972_v27 }
 0x1d0   : > { %v947_v31 = vadd.f32 %v1689_v28, %v850_v30  ;;  %v964_v32 = vmax.f32 %v944_v29, 0.0 }
 0x1d2   : > { %v965_v33 = vmax.f32 %v947_v31, 0.0 }
 0x1d4   : > { %v973_v34 = vpack.c.bf16 %v965_v33, %v964_v32 }
 0x1d6   : > { %1735 = vmatmul.mubr.bf16.gmra.mrb[36].mxu1 %v973_v34 }
 0x279   : > { %v1724_v38 = vpop.f32.mrb[32].mxu0 }
 0x27a   : > { %v1088_v39 = vadd.f32 %v1724_v38, %v1545_v37  ;;  %v1079_v40 = vpop.f32.mrb[33].mxu0 }
 0x27b   : > { %v1080_v41 = vadd.f32 %v1545_v37, %v1079_v40  ;;  %v1725_v42 = vpop.f32.mrb[34].mxu0 }
 0x27c   : > { %v1091_v43 = vadd.f32 %v1725_v42, %v1545_v37  ;;  %v1082_v44 = vpop.f32.mrb[35].mxu0  ;;  %v1147_v10 = vsel %vm1144_vm0, %v1088_v39, -1e+30 }
 0x27d   : > { %v1083_v45 = vadd.f32 %v1545_v37, %v1082_v44  ;;  %1165 = vmax.xlane.f32.xlu1 %v1147_v10  ;;  %v1145_v46 = vsel %vm1144_vm0, %v1080_v41, -1e+30 }
 0x27e   : > { %1161 = vmax.xlane.f32.xlu0 %v1145_v46  ;;  %v1148_v47 = vsel %vm1144_vm0, %v1091_v43, -1e+30 }
 0x27f   : > { %v1146_v48 = vsel %vm1144_vm0, %v1083_v45, -1e+30 }
 0x281   : > { %1167 = vmax.xlane.f32.xlu1 %v1148_v47 }
 0x282   : > { %1163 = vmax.xlane.f32.xlu0 %v1146_v48 }
 0x289   : > { %v1728_v49 = vpop.f32.mrb[36].mxu0 }
 0x28a   : > { %v1104_v50 = vadd.f32 %v1728_v49, %v1545_v37  ;;  %v1095_v51 = vpop.f32.mrb[37].mxu0 }
 0x28b   : > { %v1729_v52 = vpop.f32.mrb[38].mxu0  ;;  %v1096_v53 = vadd.f32 %v1545_v37, %v1095_v51 }
 0x28c   : > { %v1107_v54 = vadd.f32 %v1729_v52, %v1545_v37  ;;  %v1098_v55 = vpop.f32.mrb[39].mxu0  ;;  %v1151_v56 = vsel %vm1144_vm0, %v1104_v50, -1e+30 }
 0x28d   : > { %1173 = vmax.xlane.f32.xlu0 %v1151_v56  ;;  %v1099_v57 = vadd.f32 %v1545_v37, %v1098_v55  ;;  %v2555_v59 = vsel %vm1144_vm0, %v1096_v53, -1e+30 }
 0x28e   : > { %v1152_v58 = vsel %vm1144_vm0, %v1107_v54, -1e+30 }
 0x28f   : > { %1175 = vmax.xlane.f32.xlu1 %v1152_v58  ;;  %v2560_v60 = vsel %vm1144_vm0, %v1099_v57, -1e+30 }
 0x291   : > { %1169 = vmax.xlane.f32.xlu0 %v2555_v59 }
 0x293   : > { %1171 = vmax.xlane.f32.xlu1 %v2560_v60 }
 0x299   : > { %v1732_v61 = vpop.f32.mrb[32].mxu1 }
 0x29a   : > { %v1120_v62 = vadd.f32 %v1732_v61, %v1545_v37  ;;  %v1111_v63 = vpop.f32.mrb[33].mxu1 }
 0x29b   : > { %v1733_v0 = vpop.f32.mrb[34].mxu1  ;;  %v1112_v1 = vadd.f32 %v1545_v37, %v1111_v63 }
 0x29c   : > { %v1123_v2 = vadd.f32 %v1733_v0, %v1545_v37  ;;  %v1114_v3 = vpop.f32.mrb[35].mxu1  ;;  %v2565_v4 = vsel %vm1144_vm0, %v1120_v62, -1e+30 }
 0x29d   : > { %1181 = vmax.xlane.f32.xlu0 %v2565_v4  ;;  %v1115_v5 = vadd.f32 %v1545_v37, %v1114_v3  ;;  %v2575_v7 = vsel %vm1144_vm0, %v1112_v1, -1e+30 }
 0x29e   : > { %v2570_v6 = vsel %vm1144_vm0, %v1123_v2, -1e+30 }
 0x29f   : > { %1183 = vmax.xlane.f32.xlu1 %v2570_v6  ;;  %v2580_v8 = vsel %vm1144_vm0, %v1115_v5, -1e+30 }
 0x2a1   : > { %1177 = vmax.xlane.f32.xlu0 %v2575_v7 }
 0x2a3   : > { %1179 = vmax.xlane.f32.xlu1 %v2580_v8 }
 0x2a9   : > { %v1736_v9 = vpop.f32.mrb[36].mxu1 }
 0x2aa   : > { %v1127_v11 = vpop.f32.mrb[37].mxu1  ;;  %v1136_v15 = vadd.f32 %v1736_v9, %v1545_v37 }
 0x2ab   : > { %v1128_v12 = vadd.f32 %v1545_v37, %v1127_v11  ;;  %v1737_v13 = vpop.f32.mrb[38].mxu1 }
 0x2ac   : > { %v1130_v14 = vpop.f32.mrb[39].mxu1  ;;  %v1139_v18 = vadd.f32 %v1737_v13, %v1545_v37  ;;  %v2595_v20 = vsel %vm1144_vm0, %v1136_v15, -1e+30 }
 0x2ad   : > { %v1131_v16 = vadd.f32 %v1545_v37, %v1130_v14  ;;  %v2585_v17 = vsel %vm1144_vm0, %v1128_v12, -1e+30 }
 0x2ae   : > { %1185 = vmax.xlane.f32.xlu0 %v2585_v17  ;;  %v2600_v21 = vsel %vm1144_vm0, %v1139_v18, -1e+30 }
 0x2af   : > { %v2590_v19 = vsel %vm1144_vm0, %v1131_v16, -1e+30 }
 0x2b0   : > { %1187 = vmax.xlane.f32.xlu1 %v2590_v19 }
 0x2b2   : > { %1189 = vmax.xlane.f32.xlu0 %v2595_v20 }
 0x2b4   : > { %1191 = vmax.xlane.f32.xlu1 %v2600_v21 }
 0x30a   : > { %v1166_v22 = vpop.xlane.xlu1 %1165 }
 0x30b   : > { %v2603_v23 = vsub.f32 %v1147_v10, %v1166_v22  ;;  %v1162_v24 = vpop.xlane.xlu0 %1161 }
 0x30c   : > { %v2605_v25 = vsub.f32 %v1145_v46, %v1162_v24 }
 0x30d   : > { %v1213_v26 = vmul.f32 1.442695, %v2603_v23 }
 0x30e   : > { %v1209_v27 = vmul.f32 1.442695, %v2605_v25  ;;  %v1168_v28 = vpop.xlane.xlu1 %1167 }
 0x30f   : > { %1935 = vpow2.f32 %v1213_v26  ;;  %v2609_v29 = vsub.f32 %v1148_v47, %v1168_v28  ;;  %v1164_v30 = vpop.xlane.xlu0 %1163 }
 0x310   : > { %v2611_v31 = vsub.f32 %v1146_v48, %v1164_v30  ;;  %1937 = vpow2.f32 %v1209_v27 }
 0x311   : > { %v1215_v32 = vmul.f32 1.442695, %v2609_v29 }
 0x312   : > { %v1211_v33 = vmul.f32 1.442695, %v2611_v31 }
 0x313   : > { %1939 = vpow2.f32 %v1215_v32 }
 0x314   : > { %1941 = vpow2.f32 %v1211_v33 }
 0x319   : > { %v1936_v34 = vpop.eup %1935 }
 0x31a   : > { %1245 = vadd.xlane.f32.xlu0 %v1936_v34  ;;  %v1174_v35 = vpop.xlane.xlu0 %1173  ;;  %v1938_v37 = vpop.eup %1937 }
 0x31b   : > { %v2615_v36 = vsub.f32 %v1151_v56, %v1174_v35 }
 0x31c   : > { %v1176_v38 = vpop.xlane.xlu1 %1175 }
 0x31d   : > { %v1940_v39 = vpop.eup %1939  ;;  %v1221_v40 = vmul.f32 1.442695, %v2615_v36  ;;  %v2618_v41 = vsub.f32 %v1152_v58, %v1176_v38 }
 0x31e   : > { %1247 = vadd.xlane.f32.xlu1 %v1940_v39  ;;  %1241 = vadd.xlane.f32.xlu0 %v1938_v37  ;;  %v1170_v42 = vpop.xlane.xlu0 %1169  ;;  %v1942_v45 = vpop.eup %1941 }
 0x31f   : > { %1943 = vpow2.f32 %v1221_v40  ;;  %v1223_v43 = vmul.f32 1.442695, %v2618_v41  ;;  %v2622_v44 = vsub.f32 %v2555_v59, %v1170_v42 }
 0x320   : > { %v1172_v10 = vpop.xlane.xlu1 %1171 }
 0x321   : > { %1945 = vpow2.f32 %v1223_v43  ;;  %v1217_v46 = vmul.f32 1.442695, %v2622_v44  ;;  %v2626_v47 = vsub.f32 %v2560_v60, %v1172_v10 }
 0x322   : > { %1243 = vadd.xlane.f32.xlu1 %v1942_v45 }
 0x323   : > { %1947 = vpow2.f32 %v1217_v46  ;;  %v1219_v48 = vmul.f32 1.442695, %v2626_v47 }
 0x325   : > { %1949 = vpow2.f32 %v1219_v48 }
 0x329   : > { %v1944_v49 = vpop.eup %1943 }
 0x32a   : > { %1253 = vadd.xlane.f32.xlu0 %v1944_v49  ;;  %v1182_v50 = vpop.xlane.xlu0 %1181 }
 0x32b   : > { %v1946_v51 = vpop.eup %1945  ;;  %v2630_v52 = vsub.f32 %v2565_v4, %v1182_v50 }
 0x32c   : > { %v1184_v53 = vpop.xlane.xlu1 %1183  ;;  %1255 = vadd.xlane.f32.xlu1 %v1946_v51 }
 0x32d   : > { %v1948_v54 = vpop.eup %1947  ;;  %v1229_v55 = vmul.f32 1.442695, %v2630_v52  ;;  %v2634_v56 = vsub.f32 %v2570_v6, %v1184_v53 }
 0x32e   : > { %1249 = vadd.xlane.f32.xlu0 %v1948_v54  ;;  %v1178_v57 = vpop.xlane.xlu0 %1177 }
 0x32f   : > { %v1950_v58 = vpop.eup %1949  ;;  %1951 = vpow2.f32 %v1229_v55  ;;  %v1231_v59 = vmul.f32 1.442695, %v2634_v56  ;;  %v2638_v60 = vsub.f32 %v2575_v7, %v1178_v57 }
 0x330   : > { %v1180_v61 = vpop.xlane.xlu1 %1179  ;;  %1251 = vadd.xlane.f32.xlu1 %v1950_v58 }
 0x331   : > { %1953 = vpow2.f32 %v1231_v59  ;;  %v1225_v62 = vmul.f32 1.442695, %v2638_v60  ;;  %v2642_v63 = vsub.f32 %v2580_v8, %v1180_v61 }
 0x333   : > { %1955 = vpow2.f32 %v1225_v62  ;;  %v1227_v0 = vmul.f32 1.442695, %v2642_v63 }
 0x335   : > { %1957 = vpow2.f32 %v1227_v0 }
 0x339   : > { %v1952_v1 = vpop.eup %1951 }
 0x33a   : > { %1261 = vadd.xlane.f32.xlu0 %v1952_v1 }
 0x33b   : > { %v1954_v2 = vpop.eup %1953  ;;  %v1186_v3 = vpop.xlane.xlu0 %1185 }
 0x33c   : > { %v2646_v4 = vsub.f32 %v2585_v17, %v1186_v3  ;;  %1263 = vadd.xlane.f32.xlu1 %v1954_v2 }
 0x33d   : > { %v1956_v5 = vpop.eup %1955  ;;  %v1188_v6 = vpop.xlane.xlu1 %1187 }
 0x33e   : > { %v1233_v7 = vmul.f32 1.442695, %v2646_v4  ;;  %v2650_v9 = vsub.f32 %v2590_v19, %v1188_v6  ;;  %1257 = vadd.xlane.f32.xlu0 %v1956_v5 }
 0x33f   : > { %v1958_v8 = vpop.eup %1957  ;;  %v1190_v11 = vpop.xlane.xlu0 %1189 }
 0x340   : > { %1959 = vpow2.f32 %v1233_v7  ;;  %v1235_v12 = vmul.f32 1.442695, %v2650_v9  ;;  %v2654_v13 = vsub.f32 %v2595_v20, %v1190_v11  ;;  %1259 = vadd.xlane.f32.xlu1 %v1958_v8 }
 0x341   : > { %v1192_v14 = vpop.xlane.xlu1 %1191 }
 0x342   : > { %1961 = vpow2.f32 %v1235_v12  ;;  %v1237_v15 = vmul.f32 1.442695, %v2654_v13  ;;  %v2658_v16 = vsub.f32 %v2600_v21, %v1192_v14 }
 0x344   : > { %1963 = vpow2.f32 %v1237_v15  ;;  %v1239_v17 = vmul.f32 1.442695, %v2658_v16 }
 0x346   : > { %1965 = vpow2.f32 %v1239_v17 }
 0x34a   : > { %v1960_v18 = vpop.eup %1959 }
 0x34b   : > { %1265 = vadd.xlane.f32.xlu0 %v1960_v18 }
 0x34c   : > { %v1962_v19 = vpop.eup %1961 }
 0x34d   : > { %1267 = vadd.xlane.f32.xlu1 %v1962_v19 }
 0x34e   : > { %v1964_v22 = vpop.eup %1963 }
 0x34f   : > { %1269 = vadd.xlane.f32.xlu0 %v1964_v22 }
 0x350   : > { %v1966_v20 = vpop.eup %1965 }
 0x351   : > { %1271 = vadd.xlane.f32.xlu1 %v1966_v20 }
 0x3a7   : > { %v1246_v24 = vpop.xlane.xlu0 %1245 }
 0x3a8   : > { %1967 = vlog2.f32 %v1246_v24 }
 0x3ab   : > { %v1248_v26 = vpop.xlane.xlu1 %1247  ;;  %v1242_v27 = vpop.xlane.xlu0 %1241 }
 0x3ac   : > { %1969 = vlog2.f32 %v1248_v26 }
 0x3ad   : > { %1971 = vlog2.f32 %v1242_v27 }
 0x3af   : > { %v1244_v21 = vpop.xlane.xlu1 %1243 }
 0x3b0   : > { %1973 = vlog2.f32 %v1244_v21 }
 0x3b2   : > { %v1968_v28 = vpop.eup %1967 }
 0x3b3   : > { %v1278_v30 = vmul.f32 0.6931472, %v1968_v28 }
 0x3b5   : > { %v1307_v32 = vsub.f32 %v2603_v23, %v1278_v30 }
 0x3b6   : > { %v1970_v33 = vpop.eup %1969 }
 0x3b7   : > { %v1972_v34 = vpop.eup %1971  ;;  %1323 = vst [vmem:[%s2663_s26 + $0x10] sm:$0xff] %v1307_v32  ;;  %v1280_v35 = vmul.f32 0.6931472, %v1970_v33  ;;  %v1254_v37 = vpop.xlane.xlu0 %1253 }
 0x3b8   : > { %v1274_v38 = vmul.f32 0.6931472, %v1972_v34  ;;  %1975 = vlog2.f32 %v1254_v37 }
 0x3b9   : > { %v1308_v39 = vsub.f32 %v2609_v29, %v1280_v35  ;;  %v1256_v40 = vpop.xlane.xlu1 %1255 }
 0x3ba   : > { %v1974_v42 = vpop.eup %1973  ;;  %v1305_v43 = vsub.f32 %v2605_v25, %v1274_v38  ;;  %1977 = vlog2.f32 %v1256_v40 }
 0x3bb   : > { %1324 = vst [vmem:[%s2663_s26 + $0x18] sm:$0xff] %v1308_v39  ;;  %v1276_v23 = vmul.f32 0.6931472, %v1974_v42  ;;  %v1250_v10 = vpop.xlane.xlu0 %1249 }
 0x3bc   : > { %1321 = vst [vmem:[%s2663_s26] sm:$0xff] %v1305_v43  ;;  %1979 = vlog2.f32 %v1250_v10 }
 0x3bd   : > { %v1306_v45 = vsub.f32 %v2611_v31, %v1276_v23  ;;  %v1252_v46 = vpop.xlane.xlu1 %1251 }
 0x3be   : > { %1981 = vlog2.f32 %v1252_v46 }
 0x3bf   : > { %1322 = vst [vmem:[%s2663_s26 + $0x8] sm:$0xff] %v1306_v45 }
 0x3c2   : > { %v1976_v48 = vpop.eup %1975 }
 0x3c3   : > { %v1286_v49 = vmul.f32 0.6931472, %v1976_v48 }
 0x3c4   : > { %v1978_v29 = vpop.eup %1977 }
 0x3c5   : > { %v1311_v50 = vsub.f32 %v2615_v36, %v1286_v49  ;;  %v1288_v25 = vmul.f32 0.6931472, %v1978_v29 }
 0x3c6   : > { %v1980_v51 = vpop.eup %1979 }
 0x3c7   : > { %1327 = vst [vmem:[%s2663_s26 + $0x30] sm:$0xff] %v1311_v50  ;;  %v1312_v53 = vsub.f32 %v2618_v41, %v1288_v25  ;;  %v1282_v54 = vmul.f32 0.6931472, %v1980_v51  ;;  %v1262_v55 = vpop.xlane.xlu0 %1261 }
 0x3c8   : > { %v1982_v57 = vpop.eup %1981  ;;  %1983 = vlog2.f32 %v1262_v55 }
 0x3c9   : > { %1328 = vst [vmem:[%s2663_s26 + $0x38] sm:$0xff] %v1312_v53  ;;  %v1309_v31 = vsub.f32 %v2622_v44, %v1282_v54  ;;  %v1284_v58 = vmul.f32 0.6931472, %v1982_v57  ;;  %v1264_v59 = vpop.xlane.xlu1 %1263 }
 0x3ca   : > { %1985 = vlog2.f32 %v1264_v59 }
 0x3cb   : > { %1325 = vst [vmem:[%s2663_s26 + $0x20] sm:$0xff] %v1309_v31  ;;  %v1310_v36 = vsub.f32 %v2626_v47, %v1284_v58  ;;  %v1258_v61 = vpop.xlane.xlu0 %1257 }
 0x3cc   : > { %1987 = vlog2.f32 %v1258_v61 }
 0x3cd   : > { %1326 = vst [vmem:[%s2663_s26 + $0x28] sm:$0xff] %v1310_v36  ;;  %v1260_v62 = vpop.xlane.xlu1 %1259 }
 0x3ce   : > { %1989 = vlog2.f32 %v1260_v62 }
 0x3d2   : > { %v1984_v41 = vpop.eup %1983 }
 0x3d3   : > { %v1294_v0 = vmul.f32 0.6931472, %v1984_v41 }
 0x3d4   : > { %v1986_v1 = vpop.eup %1985 }
 0x3d5   : > { %v1315_v2 = vsub.f32 %v2630_v52, %v1294_v0  ;;  %v1296_v44 = vmul.f32 0.6931472, %v1986_v1 }
 0x3d6   : > { %v1988_v3 = vpop.eup %1987 }
 0x3d7   : > { %1331 = vst [vmem:[%s2663_s26 + $0x50] sm:$0xff] %v1315_v2  ;;  %v1316_v5 = vsub.f32 %v2634_v56, %v1296_v44  ;;  %v1290_v6 = vmul.f32 0.6931472, %v1988_v3 }
 0x3d8   : > { %v1990_v47 = vpop.eup %1989  ;;  %v1266_v7 = vpop.xlane.xlu0 %1265 }
 0x3d9   : > { %1332 = vst [vmem:[%s2663_s26 + $0x58] sm:$0xff] %v1316_v5  ;;  %v1313_v8 = vsub.f32 %v2638_v60, %v1290_v6  ;;  %v1292_v11 = vmul.f32 0.6931472, %v1990_v47  ;;  %1991 = vlog2.f32 %v1266_v7 }
 0x3da   : > { %v1268_v12 = vpop.xlane.xlu1 %1267 }
 0x3db   : > { %1329 = vst [vmem:[%s2663_s26 + $0x40] sm:$0xff] %v1313_v8  ;;  %v1314_v14 = vsub.f32 %v2642_v63, %v1292_v11  ;;  %1993 = vlog2.f32 %v1268_v12 }
 0x3dc   : > { %v1270_v52 = vpop.xlane.xlu0 %1269 }
 0x3dd   : > { %1330 = vst [vmem:[%s2663_s26 + $0x48] sm:$0xff] %v1314_v14  ;;  %1995 = vlog2.f32 %v1270_v52 }
 0x3de   : > { %v1272_v56 = vpop.xlane.xlu1 %1271 }
 0x3df   : > { %1997 = vlog2.f32 %v1272_v56 }
 0x3e3   : > { %v1992_v15 = vpop.eup %1991 }
 0x3e4   : > { %v1298_v17 = vmul.f32 0.6931472, %v1992_v15 }
 0x3e5   : > { %v1994_v60 = vpop.eup %1993 }
 0x3e6   : > { %v1317_v18 = vsub.f32 %v2646_v4, %v1298_v17  ;;  %v1300_v19 = vmul.f32 0.6931472, %v1994_v60 }
 0x3e7   : > { %v1996_v22 = vpop.eup %1995 }
 0x3e8   : > { %1333 = vst [vmem:[%s2663_s26 + $0x60] sm:$0xff] %v1317_v18  ;;  %v1318_v63 = vsub.f32 %v2650_v9, %v1300_v19  ;;  %v1302_v20 = vmul.f32 0.6931472, %v1996_v22 }
 0x3e9   : > { %v1998_v24 = vpop.eup %1997 }
 0x3ea   : > { %1334 = vst [vmem:[%s2663_s26 + $0x68] sm:$0xff] %v1318_v63  ;;  %v1319_v26 = vsub.f32 %v2654_v13, %v1302_v20  ;;  %v1304_v27 = vmul.f32 0.6931472, %v1998_v24 }
 0x3ec   : > { %1335 = vst [vmem:[%s2663_s26 + $0x70] sm:$0xff] %v1319_v26  ;;  %v1320_v4 = vsub.f32 %v2658_v16, %v1304_v27 }
 0x3ee   : > { %1336 = vst [vmem:[%s2663_s26 + $0x78] sm:$0xff] %v1320_v4 }
 0x3ef   : > { %2154 = shalt.err (!%p2151_p13)
}
 0x3f0   : > { %s2155_s6 = scalar_lea.hbm %s2698_s30, 2048  ;;  %s2159_s17 = scalar_lea.hbm %s2752_s5, 4096 }
 0x3f1   : > { %p2156_p9 = scmp.ne.s32.totalorder %s2698_s30, %s2155_s6  ;;  %p2160_p6 = scmp.lt.u32.totalorder %s2698_s30, %s2752_s5 }
 0x3f2   : > { %p2161_p4 = scmp.lt.u32.totalorder %s2159_s17, %s2155_s6  ;;  %p2163_p3 = scmp.lt.u32.totalorder %s2155_s6, %s2698_s30 }
 0x3f3   : > { %p2157_p0 = pnand %p2156_p9, %p2418_p10 }
 0x3f4   : > { %p2162_p8 = por %p2161_p4, %p2160_p6 }
 0x3f5   : > { %p2158_p11 = pneg %p2157_p0 }
 0x3f6   : > { %p2164_p5 = por %p2163_p3, %p2162_p8 }
 0x3f8   : > { %p2165_p7 = pnand %p2164_p5, %p2158_p11 }
 0x3fa   : > { %2168 = shalt.err (!%p2165_p7)
}
 0x3fb   : > { %s2227_s11 = smov 128   ;;  %s2228_s8 = smov 8  }
 0x3fc   : > { %1772 = dma.vmem_to_hbm [thread:$0]  (%p2418_p10), %s2700_s13, 2048, %s2698_s30, %s1338_s22, %s2227_s11, %s2227_s11, %s2228_s8  }
 0x3fd PF: > { %s1366_s15 = sand.u32 1, %s2203_s18   ;;  %p2770_p12 = scmp.ne.s32.totalorder %s2757_s25, 0 }
 0x3fe   : > { %p2771_p2 = scmp.ge.s32.totalorder %s2215_s21, 2  ;;  %s1367_s9 = scalar_lea.sflag [#allocation4], %s1366_s15 }
 0x400   : > { %p1792_p1 = pnand %p2771_p2, %p2770_p12 }
 0x402   : > { %2198 = dma.done.wait (!%p1792_p1), %s1367_s9, 2048  }
 0x403   : > { %2200 = vsyncadd (!%p1792_p1), %s1367_s9, 4294965248  ;;  %p20_p13 = scmp.ge.s32.totalorder %s2408_s14, 4   ;;  %s2772_s18 = smov %s2207_s19 }
 0x404   : > { %s2773_s19 = smov %s2211_s20  ;;  %s2774_s20 = smov %s2424_s28 }
 0x405   : > { %s2775_s21 = smov %s2408_s14  ;;  %22 = sbr.rel (!%p20_p13) target bundleno = 7 (0x7), region = 101 }
 0x40c   :  { %1372 = vsyncpa [#allocation3], 1 }
 0x40d   :  { %1374 = vsyncpa [#allocation3 + $0x1], 1 }
 0x40e   :  { %1375 = vsyncpa [#allocation6], 1 }
 0x40f   :  { %1376 = vsyncpa [#allocation9], 1 }
 0x410   :  { %1377 = vsyncpa [#allocation4], 1 }
 0x411   :  { %1379 = vsyncpa [#allocation4 + $0x1], 1 }

</bundles_post_ra>
